<compile_context>
chip_gen: v7x
topology: tpu7x:2x2x1
jax: 0.10.0
libtpu: 0.0.40
codegen_flags: <defaults>
</compile_context>

<pallas_src>
import functools

import jax
import jax.numpy as jnp
from jax.experimental import pallas as pl
from jax.experimental.pallas import tpu as pltpu


def _mhsa_kernel(x_ref, wqkv_ref, wp_ref, bp_ref, o_ref, oh_ref, *, num_heads):
    """One batch element per grid step.

    x_ref:    (1, N, C)  bf16  tokens for this batch element
    wqkv_ref: (C, 3C)    bf16  [Wq*scale | Wk | Wv], columns head-major
    wp_ref:   (C, C)     bf16  proj weight (== proj_weight.T), rows head-major
    bp_ref:   (1, C)     f32   proj bias
    o_ref:    (1, N, C)  f32   output
    oh_ref:   (N, C)     f32   VMEM scratch: head-major attention output
    """
    _, N, C = x_ref.shape
    H = num_heads
    hd = C // H

    # ---- QKV: single large MXU matmul, contraction depth C -----------------
    qkv = jnp.dot(x_ref[0], wqkv_ref[...],
                  preferred_element_type=jnp.float32)            # (N, 3C) f32

    # ---- per-head attention (static unroll over the small head count) ------
    for h in range(H):
        q_h = qkv[:, h * hd:(h + 1) * hd].astype(jnp.bfloat16)              # (N, hd)
        k_h = qkv[:, C + h * hd:C + (h + 1) * hd].astype(jnp.bfloat16)      # (N, hd)
        v_h = qkv[:, 2 * C + h * hd:2 * C + (h + 1) * hd].astype(jnp.bfloat16)

        # scores = q @ k.T  (softmax scale already folded into Wq)
        s = jax.lax.dot_general(q_h, k_h, (((1,), (1,)), ((), ())),
                                preferred_element_type=jnp.float32)         # (N, N)

        # softmax strictly in f32 (VPU/EUP)
        s = s - jnp.max(s, axis=-1, keepdims=True)
        p = jnp.exp(s)
        p = p * pl.reciprocal(jnp.sum(p, axis=-1, keepdims=True), approx=False)

        oh = jnp.dot(p.astype(jnp.bfloat16), v_h,
                     preferred_element_type=jnp.float32)                    # (N, hd)
        # assemble head-major (N, C) activation for the single proj matmul
        oh_ref[:, h * hd:(h + 1) * hd] = oh

    # ---- output projection: single (N,C)@(C,C) matmul + bias ---------------
    out = jnp.dot(oh_ref[...].astype(jnp.bfloat16), wp_ref[...],
                  preferred_element_type=jnp.float32)                       # (N, C)
    o_ref[0] = out + bp_ref[...]


def multi_head_self_attention(x, qkv_weight, proj_weight, proj_bias, num_heads):
    """Pallas forward of MultiHeadSelfAttention.

    x:           (B, N, C) float32 tokens
    qkv_weight:  (3C, C)  == nn.Linear(C, 3C, bias=False).weight  (PyTorch layout)
    proj_weight: (C, C)   == nn.Linear(C, C).weight
    proj_bias:   (C,)     == nn.Linear(C, C).bias
    """
    B, N, C = x.shape
    H = num_heads
    assert C % H == 0, "embed_dim must be divisible by num_heads"
    hd = C // H
    scale = float(hd) ** -0.5

    # One-time weight re-layout in plain JAX (outside the kernel):
    #   qkv_weight rows are ordered (qkv_idx, head, d); transposing gives a (C,3C)
    #   matrix whose columns are already head-major inside each q/k/v block.
    #   Fold the softmax scale into the Q block so the kernel never scales scores.
    wq = qkv_weight[:C].T * scale
    wk = qkv_weight[C:2 * C].T
    wv = qkv_weight[2 * C:].T
    wqkv = jnp.concatenate([wq, wk, wv], axis=1).astype(jnp.bfloat16)   # (C, 3C)
    wp = proj_weight.T.astype(jnp.bfloat16)                            # (C, C)
    bp = proj_bias.reshape(1, C).astype(jnp.float32)

    kernel = functools.partial(_mhsa_kernel, num_heads=H)

    return pl.pallas_call(
        kernel,
        out_shape=jax.ShapeDtypeStruct((B, N, C), jnp.float32),
        grid_spec=pltpu.PrefetchScalarGridSpec(
            num_scalar_prefetch=0,
            grid=(B,),
            in_specs=[
                pl.BlockSpec((1, N, C), lambda b: (b, 0, 0)),   # x (one batch element)
                pl.BlockSpec((C, 3 * C), lambda b: (0, 0)),     # qkv weight (resident)
                pl.BlockSpec((C, C), lambda b: (0, 0)),         # proj weight (resident)
                pl.BlockSpec((1, C), lambda b: (0, 0)),         # proj bias (resident)
            ],
            out_specs=pl.BlockSpec((1, N, C), lambda b: (b, 0, 0)),
            scratch_shapes=[pltpu.VMEM((N, C), jnp.float32)],
        ),
        compiler_params=pltpu.CompilerParams(
            dimension_semantics=("parallel",),
        ),
        # TODO(synk): at production ViT-big shapes (N ~ 197-577, C = 1024, H = 16)
        # set vmem_limit_bytes explicitly and move to a flash-style KV-tiled grid
        # with online softmax + padded-key masking; toy shapes fit trivially.
    )(x.astype(jnp.bfloat16), wqkv, wp, bp)


def mhsa_reference(x, qkv_weight, proj_weight, proj_bias, num_heads):
    """Plain-JAX f32 mirror of the PyTorch module (correctness check)."""
    B, N, C = x.shape
    hd = C // num_heads
    qkv = x @ qkv_weight.T                                         # (B, N, 3C)
    qkv = qkv.reshape(B, N, 3, num_heads, hd).transpose(2, 0, 3, 1, 4)
    q, k, v = qkv[0], qkv[1], qkv[2]                               # (B, H, N, hd)
    attn = (q @ k.transpose(0, 1, 3, 2)) * (hd ** -0.5)
    attn = jax.nn.softmax(attn, axis=-1)
    out = (attn @ v).transpose(0, 2, 1, 3).reshape(B, N, C)
    return out @ proj_weight.T + proj_bias


if __name__ == "__main__":
    B, N, C, H = 2, 8, 32, 4
    key = jax.random.PRNGKey(0)
    kx, kq, kp, kb = jax.random.split(key, 4)

    wscale = C ** -0.5
    x = jax.random.normal(kx, (B, N, C), dtype=jnp.float32)
    qkv_weight = wscale * jax.random.normal(kq, (3 * C, C), dtype=jnp.float32)
    proj_weight = wscale * jax.random.normal(kp, (C, C), dtype=jnp.float32)
    proj_bias = wscale * jax.random.normal(kb, (C,), dtype=jnp.float32)

    out = multi_head_self_attention(x, qkv_weight, proj_weight, proj_bias, H)
    out = jax.block_until_ready(out)
    assert out.shape == (B, N, C)

    ref = jax.block_until_ready(
        mhsa_reference(x, qkv_weight, proj_weight, proj_bias, H))
    max_err = float(jnp.max(jnp.abs(out - ref)))
    # tolerance covers bf16 MXU operands (f32 accumulation / f32 softmax) vs the
    # pure-f32 reference, plus accumulation-order rounding noise
    assert max_err < 5e-2, f"mismatch vs reference: max abs err {max_err}"

    print("KERNEL_OK")
</pallas_src>

<mosaic_0001>
module attributes {stable_mosaic.version = 11 : i64} {
  func.func @_mhsa_kernel(%arg0: i32, %arg1: memref<1x8x32xbf16, #tpu.memory_space<vmem>>, %arg2: memref<32x96xbf16, #tpu.memory_space<vmem>>, %arg3: memref<32x32xbf16, #tpu.memory_space<vmem>>, %arg4: memref<1x32xf32, #tpu.memory_space<vmem>>, %arg5: memref<1x8x32xf32, #tpu.memory_space<vmem>>, %arg6: memref<8x32xf32, #tpu.memory_space<vmem>>) attributes {dimension_semantics = [#tpu.dimension_semantics<parallel>], iteration_bounds = array<i64: 2>, scalar_prefetch = 0 : i64, scratch_operands = 1 : i64, tpu.core_type = #tpu.core_type<tc>, window_params = [{transform_indices = @transform_0, window_bounds = array<i64: 1, 8, 32>}, {pipeline_mode = #tpu.pipeline_mode<synchronous>, transform_indices = @transform_1, window_bounds = array<i64: 32, 96>}, {pipeline_mode = #tpu.pipeline_mode<synchronous>, transform_indices = @transform_2, window_bounds = array<i64: 32, 32>}, {pipeline_mode = #tpu.pipeline_mode<synchronous>, transform_indices = @transform_3, window_bounds = array<i64: 1, 32>}, {transform_indices = @transform_4, window_bounds = array<i64: 1, 8, 32>}]} {
    %c0 = arith.constant 0 : index
    %c0_0 = arith.constant 0 : index
    %c0_1 = arith.constant 0 : index
    %0 = vector.load %arg1[%c0, %c0_0, %c0_1] : memref<1x8x32xbf16, #tpu.memory_space<vmem>>, vector<1x8x32xbf16>
    %1 = vector.shape_cast %0 : vector<1x8x32xbf16> to vector<8x32xbf16>
    %c0_2 = arith.constant 0 : index
    %c0_3 = arith.constant 0 : index
    %2 = vector.load %arg2[%c0_2, %c0_3] : memref<32x96xbf16, #tpu.memory_space<vmem>>, vector<32x96xbf16>
    %cst = arith.constant dense<0.000000e+00> : vector<8x96xf32>
    %3 = tpu.matmul %1, %2, %cst {dimension_numbers = #tpu.dot_dimension_numbers<[1], [0], [0], [1], [0, 0, 1, 1], [], []>} : vector<8x32xbf16>, vector<32x96xbf16>, vector<8x96xf32> -> vector<8x96xf32>
    %4 = vector.extract_strided_slice %3 {offsets = [0, 0], sizes = [8, 8], strides = [1, 1]} : vector<8x96xf32> to vector<8x8xf32>
    %5 = arith.truncf %4 : vector<8x8xf32> to vector<8x8xbf16>
    %6 = vector.extract_strided_slice %3 {offsets = [0, 32], sizes = [8, 8], strides = [1, 1]} : vector<8x96xf32> to vector<8x8xf32>
    %7 = arith.truncf %6 : vector<8x8xf32> to vector<8x8xbf16>
    %8 = vector.extract_strided_slice %3 {offsets = [0, 64], sizes = [8, 8], strides = [1, 1]} : vector<8x96xf32> to vector<8x8xf32>
    %9 = arith.truncf %8 : vector<8x8xf32> to vector<8x8xbf16>
    %cst_4 = arith.constant dense<0.000000e+00> : vector<8x8xf32>
    %10 = tpu.matmul %5, %7, %cst_4 {dimension_numbers = #tpu.dot_dimension_numbers<[1], [1], [0], [0], [0, 0, 1, 0], [], []>} : vector<8x8xbf16>, vector<8x8xbf16>, vector<8x8xf32> -> vector<8x8xf32>
    %cst_5 = arith.constant dense<0xFF800000> : vector<8xf32>
    %11 = vector.multi_reduction <maximumf>, %10, %cst_5 [1] : vector<8x8xf32> to vector<8xf32>
    %12 = vector.shape_cast %11 : vector<8xf32> to vector<8x1xf32>
    %13 = vector.broadcast %12 : vector<8x1xf32> to vector<8x8xf32>
    %14 = arith.subf %10, %13 : vector<8x8xf32>
    %15 = math.exp %14 : vector<8x8xf32>
    %cst_6 = arith.constant dense<0.000000e+00> : vector<8xf32>
    %16 = vector.multi_reduction <add>, %15, %cst_6 [1] : vector<8x8xf32> to vector<8xf32>
    %17 = vector.shape_cast %16 : vector<8xf32> to vector<8x1xf32>
    %18 = tpu.reciprocal %17 : vector<8x1xf32> -> vector<8x1xf32>
    %19 = vector.broadcast %18 : vector<8x1xf32> to vector<8x8xf32>
    %20 = arith.mulf %15, %19 : vector<8x8xf32>
    %21 = arith.truncf %20 : vector<8x8xf32> to vector<8x8xbf16>
    %cst_7 = arith.constant dense<0.000000e+00> : vector<8x8xf32>
    %22 = tpu.matmul %21, %9, %cst_7 {dimension_numbers = #tpu.dot_dimension_numbers<[1], [0], [0], [1], [0, 0, 1, 1], [], []>} : vector<8x8xbf16>, vector<8x8xbf16>, vector<8x8xf32> -> vector<8x8xf32>
    %c0_8 = arith.constant 0 : index
    %c0_9 = arith.constant 0 : index
    %23 = vector.load %arg6[%c0_8, %c0_9] : memref<8x32xf32, #tpu.memory_space<vmem>>, vector<8x8xf32>
    tpu.vector_store %arg6[%c0_8, %c0_9], %22 {strides = array<i32>} : memref<8x32xf32, #tpu.memory_space<vmem>>, vector<8x8xf32>,
    %24 = vector.extract_strided_slice %3 {offsets = [0, 8], sizes = [8, 8], strides = [1, 1]} : vector<8x96xf32> to vector<8x8xf32>
    %25 = arith.truncf %24 : vector<8x8xf32> to vector<8x8xbf16>
    %26 = vector.extract_strided_slice %3 {offsets = [0, 40], sizes = [8, 8], strides = [1, 1]} : vector<8x96xf32> to vector<8x8xf32>
    %27 = arith.truncf %26 : vector<8x8xf32> to vector<8x8xbf16>
    %28 = vector.extract_strided_slice %3 {offsets = [0, 72], sizes = [8, 8], strides = [1, 1]} : vector<8x96xf32> to vector<8x8xf32>
    %29 = arith.truncf %28 : vector<8x8xf32> to vector<8x8xbf16>
    %cst_10 = arith.constant dense<0.000000e+00> : vector<8x8xf32>
    %30 = tpu.matmul %25, %27, %cst_10 {dimension_numbers = #tpu.dot_dimension_numbers<[1], [1], [0], [0], [0, 0, 1, 0], [], []>} : vector<8x8xbf16>, vector<8x8xbf16>, vector<8x8xf32> -> vector<8x8xf32>
    %cst_11 = arith.constant dense<0xFF800000> : vector<8xf32>
    %31 = vector.multi_reduction <maximumf>, %30, %cst_11 [1] : vector<8x8xf32> to vector<8xf32>
    %32 = vector.shape_cast %31 : vector<8xf32> to vector<8x1xf32>
    %33 = vector.broadcast %32 : vector<8x1xf32> to vector<8x8xf32>
    %34 = arith.subf %30, %33 : vector<8x8xf32>
    %35 = math.exp %34 : vector<8x8xf32>
    %cst_12 = arith.constant dense<0.000000e+00> : vector<8xf32>
    %36 = vector.multi_reduction <add>, %35, %cst_12 [1] : vector<8x8xf32> to vector<8xf32>
    %37 = vector.shape_cast %36 : vector<8xf32> to vector<8x1xf32>
    %38 = tpu.reciprocal %37 : vector<8x1xf32> -> vector<8x1xf32>
    %39 = vector.broadcast %38 : vector<8x1xf32> to vector<8x8xf32>
    %40 = arith.mulf %35, %39 : vector<8x8xf32>
    %41 = arith.truncf %40 : vector<8x8xf32> to vector<8x8xbf16>
    %cst_13 = arith.constant dense<0.000000e+00> : vector<8x8xf32>
    %42 = tpu.matmul %41, %29, %cst_13 {dimension_numbers = #tpu.dot_dimension_numbers<[1], [0], [0], [1], [0, 0, 1, 1], [], []>} : vector<8x8xbf16>, vector<8x8xbf16>, vector<8x8xf32> -> vector<8x8xf32>
    %c0_14 = arith.constant 0 : index
    %c8 = arith.constant 8 : index
    %43 = vector.load %arg6[%c0_14, %c8] : memref<8x32xf32, #tpu.memory_space<vmem>>, vector<8x8xf32>
    tpu.vector_store %arg6[%c0_14, %c8], %42 {strides = array<i32>} : memref<8x32xf32, #tpu.memory_space<vmem>>, vector<8x8xf32>,
    %44 = vector.extract_strided_slice %3 {offsets = [0, 16], sizes = [8, 8], strides = [1, 1]} : vector<8x96xf32> to vector<8x8xf32>
    %45 = arith.truncf %44 : vector<8x8xf32> to vector<8x8xbf16>
    %46 = vector.extract_strided_slice %3 {offsets = [0, 48], sizes = [8, 8], strides = [1, 1]} : vector<8x96xf32> to vector<8x8xf32>
    %47 = arith.truncf %46 : vector<8x8xf32> to vector<8x8xbf16>
    %48 = vector.extract_strided_slice %3 {offsets = [0, 80], sizes = [8, 8], strides = [1, 1]} : vector<8x96xf32> to vector<8x8xf32>
    %49 = arith.truncf %48 : vector<8x8xf32> to vector<8x8xbf16>
    %cst_15 = arith.constant dense<0.000000e+00> : vector<8x8xf32>
    %50 = tpu.matmul %45, %47, %cst_15 {dimension_numbers = #tpu.dot_dimension_numbers<[1], [1], [0], [0], [0, 0, 1, 0], [], []>} : vector<8x8xbf16>, vector<8x8xbf16>, vector<8x8xf32> -> vector<8x8xf32>
    %cst_16 = arith.constant dense<0xFF800000> : vector<8xf32>
    %51 = vector.multi_reduction <maximumf>, %50, %cst_16 [1] : vector<8x8xf32> to vector<8xf32>
    %52 = vector.shape_cast %51 : vector<8xf32> to vector<8x1xf32>
    %53 = vector.broadcast %52 : vector<8x1xf32> to vector<8x8xf32>
    %54 = arith.subf %50, %53 : vector<8x8xf32>
    %55 = math.exp %54 : vector<8x8xf32>
    %cst_17 = arith.constant dense<0.000000e+00> : vector<8xf32>
    %56 = vector.multi_reduction <add>, %55, %cst_17 [1] : vector<8x8xf32> to vector<8xf32>
    %57 = vector.shape_cast %56 : vector<8xf32> to vector<8x1xf32>
    %58 = tpu.reciprocal %57 : vector<8x1xf32> -> vector<8x1xf32>
    %59 = vector.broadcast %58 : vector<8x1xf32> to vector<8x8xf32>
    %60 = arith.mulf %55, %59 : vector<8x8xf32>
    %61 = arith.truncf %60 : vector<8x8xf32> to vector<8x8xbf16>
    %cst_18 = arith.constant dense<0.000000e+00> : vector<8x8xf32>
    %62 = tpu.matmul %61, %49, %cst_18 {dimension_numbers = #tpu.dot_dimension_numbers<[1], [0], [0], [1], [0, 0, 1, 1], [], []>} : vector<8x8xbf16>, vector<8x8xbf16>, vector<8x8xf32> -> vector<8x8xf32>
    %c0_19 = arith.constant 0 : index
    %c16 = arith.constant 16 : index
    %63 = vector.load %arg6[%c0_19, %c16] : memref<8x32xf32, #tpu.memory_space<vmem>>, vector<8x8xf32>
    tpu.vector_store %arg6[%c0_19, %c16], %62 {strides = array<i32>} : memref<8x32xf32, #tpu.memory_space<vmem>>, vector<8x8xf32>,
    %64 = vector.extract_strided_slice %3 {offsets = [0, 24], sizes = [8, 8], strides = [1, 1]} : vector<8x96xf32> to vector<8x8xf32>
    %65 = arith.truncf %64 : vector<8x8xf32> to vector<8x8xbf16>
    %66 = vector.extract_strided_slice %3 {offsets = [0, 56], sizes = [8, 8], strides = [1, 1]} : vector<8x96xf32> to vector<8x8xf32>
    %67 = arith.truncf %66 : vector<8x8xf32> to vector<8x8xbf16>
    %68 = vector.extract_strided_slice %3 {offsets = [0, 88], sizes = [8, 8], strides = [1, 1]} : vector<8x96xf32> to vector<8x8xf32>
    %69 = arith.truncf %68 : vector<8x8xf32> to vector<8x8xbf16>
    %cst_20 = arith.constant dense<0.000000e+00> : vector<8x8xf32>
    %70 = tpu.matmul %65, %67, %cst_20 {dimension_numbers = #tpu.dot_dimension_numbers<[1], [1], [0], [0], [0, 0, 1, 0], [], []>} : vector<8x8xbf16>, vector<8x8xbf16>, vector<8x8xf32> -> vector<8x8xf32>
    %cst_21 = arith.constant dense<0xFF800000> : vector<8xf32>
    %71 = vector.multi_reduction <maximumf>, %70, %cst_21 [1] : vector<8x8xf32> to vector<8xf32>
    %72 = vector.shape_cast %71 : vector<8xf32> to vector<8x1xf32>
    %73 = vector.broadcast %72 : vector<8x1xf32> to vector<8x8xf32>
    %74 = arith.subf %70, %73 : vector<8x8xf32>
    %75 = math.exp %74 : vector<8x8xf32>
    %cst_22 = arith.constant dense<0.000000e+00> : vector<8xf32>
    %76 = vector.multi_reduction <add>, %75, %cst_22 [1] : vector<8x8xf32> to vector<8xf32>
    %77 = vector.shape_cast %76 : vector<8xf32> to vector<8x1xf32>
    %78 = tpu.reciprocal %77 : vector<8x1xf32> -> vector<8x1xf32>
    %79 = vector.broadcast %78 : vector<8x1xf32> to vector<8x8xf32>
    %80 = arith.mulf %75, %79 : vector<8x8xf32>
    %81 = arith.truncf %80 : vector<8x8xf32> to vector<8x8xbf16>
    %cst_23 = arith.constant dense<0.000000e+00> : vector<8x8xf32>
    %82 = tpu.matmul %81, %69, %cst_23 {dimension_numbers = #tpu.dot_dimension_numbers<[1], [0], [0], [1], [0, 0, 1, 1], [], []>} : vector<8x8xbf16>, vector<8x8xbf16>, vector<8x8xf32> -> vector<8x8xf32>
    %c0_24 = arith.constant 0 : index
    %c24 = arith.constant 24 : index
    %83 = vector.load %arg6[%c0_24, %c24] : memref<8x32xf32, #tpu.memory_space<vmem>>, vector<8x8xf32>
    tpu.vector_store %arg6[%c0_24, %c24], %82 {strides = array<i32>} : memref<8x32xf32, #tpu.memory_space<vmem>>, vector<8x8xf32>,
    %c0_25 = arith.constant 0 : index
    %c0_26 = arith.constant 0 : index
    %84 = vector.load %arg6[%c0_25, %c0_26] : memref<8x32xf32, #tpu.memory_space<vmem>>, vector<8x32xf32>
    %85 = arith.truncf %84 : vector<8x32xf32> to vector<8x32xbf16>
    %c0_27 = arith.constant 0 : index
    %c0_28 = arith.constant 0 : index
    %86 = vector.load %arg3[%c0_27, %c0_28] : memref<32x32xbf16, #tpu.memory_space<vmem>>, vector<32x32xbf16>
    %cst_29 = arith.constant dense<0.000000e+00> : vector<8x32xf32>
    %87 = tpu.matmul %85, %86, %cst_29 {dimension_numbers = #tpu.dot_dimension_numbers<[1], [0], [0], [1], [0, 0, 1, 1], [], []>} : vector<8x32xbf16>, vector<32x32xbf16>, vector<8x32xf32> -> vector<8x32xf32>
    %c0_30 = arith.constant 0 : index
    %c0_31 = arith.constant 0 : index
    %88 = vector.load %arg4[%c0_30, %c0_31] : memref<1x32xf32, #tpu.memory_space<vmem>>, vector<1x32xf32>
    %89 = vector.broadcast %88 : vector<1x32xf32> to vector<8x32xf32>
    %90 = arith.addf %87, %89 : vector<8x32xf32>
    %c0_32 = arith.constant 0 : index
    %c0_33 = arith.constant 0 : index
    %c0_34 = arith.constant 0 : index
    %91 = vector.load %arg5[%c0_32, %c0_33, %c0_34] : memref<1x8x32xf32, #tpu.memory_space<vmem>>, vector<1x8x32xf32>
    %92 = vector.shape_cast %91 : vector<1x8x32xf32> to vector<8x32xf32>
    %93 = vector.shape_cast %90 : vector<8x32xf32> to vector<1x8x32xf32>
    tpu.vector_store %arg5[%c0_32, %c0_33, %c0_34], %93 {strides = array<i32>} : memref<1x8x32xf32, #tpu.memory_space<vmem>>, vector<1x8x32xf32>,
    return
  }
  func.func @transform_0(%arg0: i32) -> (i32, i32, i32) {
    %c0_i32 = arith.constant 0 : i32
    %c0_i32_0 = arith.constant 0 : i32
    %c0_i32_1 = arith.constant 0 : i32
    return %arg0, %c0_i32, %c0_i32_0 : i32, i32, i32
  }
  func.func @transform_1(%arg0: i32) -> (i32, i32) {
    %c0_i32 = arith.constant 0 : i32
    %c0_i32_0 = arith.constant 0 : i32
    %c0_i32_1 = arith.constant 0 : i32
    return %c0_i32, %c0_i32_0 : i32, i32
  }
  func.func @transform_2(%arg0: i32) -> (i32, i32) {
    %c0_i32 = arith.constant 0 : i32
    %c0_i32_0 = arith.constant 0 : i32
    %c0_i32_1 = arith.constant 0 : i32
    return %c0_i32, %c0_i32_0 : i32, i32
  }
  func.func @transform_3(%arg0: i32) -> (i32, i32) {
    %c0_i32 = arith.constant 0 : i32
    %c0_i32_0 = arith.constant 0 : i32
    %c0_i32_1 = arith.constant 0 : i32
    return %c0_i32, %c0_i32_0 : i32, i32
  }
  func.func @transform_4(%arg0: i32) -> (i32, i32, i32) {
    %c0_i32 = arith.constant 0 : i32
    %c0_i32_0 = arith.constant 0 : i32
    %c0_i32_1 = arith.constant 0 : i32
    return %arg0, %c0_i32, %c0_i32_0 : i32, i32, i32
  }
}

</mosaic_0001>

<bundles_post_ra>
// kernel: tpu_custom_call.1
= control target key start
LH: loop header
LB: loop body
LE: loop exit
PB: predicated region body
PF: predicated region fallthrough
CT: control target
= control target key end

     0   :  { %9 = vsyncpa [#allocation4], 0  ;;  %s1671_s0 = inlined_call_operand.hbm [shape: bf16[2,8,32], index: 0, kind: input, shape index: {}]   ;;  %s1672_s1 = inlined_call_operand.hbm [shape: bf16[32,96], index: 1, kind: input, shape index: {}]   ;;  %s1673_s2 = inlined_call_operand.hbm [shape: bf16[32,32], index: 2, kind: input, shape index: {}]   ;;  %s1674_s3 = inlined_call_operand.vmem [shape: f32[1,32], index: 3, kind: input, shape index: {}]   ;;  %s1675_s4 = inlined_call_operand.hbm [shape: f32[2,8,32], index: 4, kind: output, shape index: {}]  }
   0x1   :  { %11 = vsyncpa [#allocation4 + $0x1], 0 }
   0x2   :  { %12 = vsyncpa [#allocation7], 0 }
   0x3   :  { %13 = vsyncpa [#allocation5], 0 }
   0x4   :  { %15 = vsyncpa [#allocation5 + $0x1], 0  ;;  %s1364_s15 = smov 0   ;;  %s1366_s16 = smov 0  }
   0x5   :  { %s1368_s17 = smov 0   ;;  %s1370_s18 = smov 0  }
   0x6 LB: > { %s1385_s19 = sadd.s32 4294967295, %s1315_s18   ;;  %s937_s20 = sadd.s32 4294967294, %s1315_s18   ;;  %s1315_s18 = sphi %s1370_s18, %s1695_s18   ;;  %s1311_s17 = sphi %s1368_s17, %s1694_s17   ;;  %s1307_s16 = sphi %s1366_s16, %s1693_s16   ;;  %s1303_s15 = sphi %s1364_s15, %s1692_s15  }
   0x7   : > { %p41_p0 = scmp.ne.s32.totalorder %s1307_s16, %s1303_s15  ;;  %p1676_p1 = scmp.eq.s32.totalorder %s1385_s19, 0 }
   0x8   : > { %p134_p3 = scmp.eq.s32.totalorder %s937_s20, 1  ;;  %p938_p5 = scmp.ge.s32.totalorder %s1315_s18, 1 }
   0x9   : > { %p1394_p4 = por %p1676_p1, %p41_p0  ;;  %p141_p7 = scmp.lt.s32.totalorder %s1315_s18, 3 }
   0xa   : > { %p1399_p6 = por %p134_p3, %p41_p0  ;;  %s1317_s24 = smov [#allocation6]  }
   0xb   : > { %s1679_s21 = scalar_select %p1394_p4, 1, 0 }
   0xc   : > { %s1680_s22 = scalar_select %p1399_p6, 1, 0 }
   0xd   : > { %p1404_p8 = pnand %p938_p5, %p141_p7  ;;  %s153_s25 = sshll.u32 %s1317_s24, 4  ;;  %s1408_s25 = int_to_ptr.vmem [resolvable:$true] %s153_s25 }
   0xe   : > { %s1318_s27 = smov [#allocation8]   ;;  %s1159_s5 = scalar_lea.hbm %s1672_s1, 256 }
   0xf   : > { %p1066_p9 = pneg %p1404_p8  ;;  %s166_s28 = sshll.u32 %s1318_s27, 4  ;;  %s1419_s28 = int_to_ptr.vmem [resolvable:$true] %s166_s28 }
  0x10   : > { %p1160_p12 = scmp.ne.s32.totalorder %s1672_s1, %s1159_s5  ;;  %p1166_p5 = scmp.lt.u32.totalorder %s1159_s5, %s1672_s1 }
  0x11   : > { %p1415_p11 = pnand %p1066_p9, %p1676_p1 }
  0x13   : > { %p1161_p13 = pneg %p1415_p11 }
  0x15   : > { %p1162_p0 = pnand %p1161_p13, %p1160_p12 }
  0x17   : > { %p1163_p3 = pneg %p1162_p0 }
  0x19   : > { %p1168_p7 = pnand %p1166_p5, %p1163_p3 }
  0x1b   : > { %1171 = shalt.err (!%p1168_p7)
}
  0x1c   : > { %s1172_s10 = scalar_lea.vmem %s1408_s25, 256  ;;  %p1180_p2 = scmp.lt.s32.totalorder %s1408_s25, %s1408_s25 }
  0x1d   : > { %p1173_p9 = scmp.ne.s32.totalorder %s1408_s25, %s1172_s10  ;;  %p1181_p12 = scmp.lt.s32.totalorder %s1172_s10, %s1172_s10 }
  0x1f   : > { %p1175_p10 = pnand %p1173_p9, %p1161_p13  ;;  %p1182_p0 = por %p1181_p12, %p1180_p2 }
  0x21   : > { %p1176_p1 = pneg %p1175_p10 }
  0x23   : > { %p1183_p6 = pnand %p1182_p0, %p1176_p1 }
  0x25   : > { %1186 = shalt.err (!%p1183_p6)
}
  0x26   : > { %s1319_s11 = smov 64   ;;  %s1320_s12 = smov 4  }
  0x27   : > { %1069 = dma.hbm_to_vmem [thread:$0]  (!%p1415_p11), %s1672_s1, 256, %s1408_s25, [#allocation7], %s1319_s11, %s1319_s11, %s1320_s12  }
  0x28   : > { %s1187_s27 = scalar_lea.hbm %s1673_s2, 256 }
  0x29   : > { %p1188_p2 = scmp.ne.s32.totalorder %s1673_s2, %s1187_s27  ;;  %p1194_p10 = scmp.lt.u32.totalorder %s1187_s27, %s1673_s2 }
  0x2b   : > { %p1190_p1 = pnand %p1188_p2, %p1161_p13 }
  0x2d   : > { %p1191_p6 = pneg %p1190_p1 }
  0x2f   : > { %p1196_p3 = pnand %p1194_p10, %p1191_p6 }
  0x31   : > { %1199 = shalt.err (!%p1196_p3)
}
  0x32   : > { %s1200_s25 = scalar_lea.vmem %s1419_s28, 256  ;;  %p1208_p12 = scmp.lt.s32.totalorder %s1419_s28, %s1419_s28 }
  0x33   : > { %p1201_p5 = scmp.ne.s32.totalorder %s1419_s28, %s1200_s25  ;;  %p1209_p0 = scmp.lt.s32.totalorder %s1200_s25, %s1200_s25 }
  0x35   : > { %p1203_p7 = pnand %p1201_p5, %p1161_p13  ;;  %p1210_p2 = por %p1209_p0, %p1208_p12 }
  0x37   : > { %p1204_p9 = pneg %p1203_p7 }
  0x39   : > { %p1211_p1 = pnand %p1210_p2, %p1204_p9 }
  0x3b   : > { %1214 = shalt.err (!%p1211_p1)
}
  0x3c   : > { %1072 = dma.hbm_to_vmem [thread:$0]  (!%p1415_p11), %s1673_s2, 256, %s1419_s28, [#allocation7], %s1319_s11, %s1319_s11, %s1320_s12  }
  0x3d   : > { %s1474_s9 = sadd.s32 1, %s1315_s18   ;;  %s28_s26 = sadd.s32 1, %s1311_s17 }
  0x3e   : > { %s25_s10 = ssub.s32 %s1315_s18, %s1474_s9  ;;  %p35_p13 = scmp.ne.s32.totalorder %s1311_s17, %s1307_s16 }
  0x3f   : > { %p26_p6 = scmp.eq.s32.totalorder %s25_s10, 0  ;;  %p36_p10 = scmp.eq.s32.totalorder %s1315_s18, 0 }
  0x40   : > { %p1683_p3 = scmp.eq.s32.totalorder %s1385_s19, 1  ;;  %p1083_p7 = scmp.lt.s32.totalorder %s1315_s18, 2 }
  0x41   : > { %s1490_s14 = scalar_select %p26_p6, %s1311_s17, %s28_s26  }
  0x42   : > { %p1484_p5 = por %p1683_p3, %p35_p13  ;;  %p37_p9 = por %p36_p10, %p35_p13 }
  0x43   : > { %s183_s20 = sand.u32 1, %s1311_s17   ;;  %s943_s28 = sshll.u32 %s1315_s18, 6 }
  0x44   : > { %s1684_s13 = scalar_select %p1484_p5, 1, 0 }
  0x45   : > { %s942_s24 = sshll.u32 %s183_s20, 2  ;;  %s1497_s27 = scalar_lea.hbm %s1671_s0, %s943_s28 }
  0x46   : > { %s187_s29 = scalar_lea.vmem [#allocation3], %s942_s24  ;;  %p1501_p11 = pnand %p1083_p7, %p37_p9 }
  0x47   : > { %s194_s30 = sshll.u32 %s187_s29, 4  ;;  %s184_s6 = scalar_lea.sflag [#allocation4], %s183_s20  ;;  %s1499_s30 = int_to_ptr.vmem [resolvable:$true] %s194_s30 }
  0x48   : > { %s1215_s25 = scalar_lea.hbm %s1497_s27, 64  ;;  %p1217_p0 = pneg %p1501_p11 }
  0x49   : > { %p1216_p12 = scmp.ne.s32.totalorder %s1497_s27, %s1215_s25  ;;  %s1220_s26 = scalar_lea.hbm %s1671_s0, 128 }
  0x4a   : > { %p1221_p13 = scmp.lt.u32.totalorder %s1497_s27, %s1671_s0  ;;  %p1222_p6 = scmp.lt.u32.totalorder %s1220_s26, %s1215_s25 }
  0x4b   : > { %p1218_p2 = pnand %p1217_p0, %p1216_p12  ;;  %p1224_p3 = scmp.lt.u32.totalorder %s1215_s25, %s1497_s27 }
  0x4c   : > { %p1223_p10 = por %p1222_p6, %p1221_p13 }
  0x4d   : > { %p1219_p1 = pneg %p1218_p2 }
  0x4e   : > { %p1225_p7 = por %p1224_p3, %p1223_p10 }
  0x50   : > { %p1226_p9 = pnand %p1225_p7, %p1219_p1 }
  0x52   : > { %1229 = shalt.err (!%p1226_p9)
}
  0x53   : > { %s1230_s20 = scalar_lea.vmem %s1499_s30, 64  ;;  %s1321_s28 = smov [#allocation3]  }
  0x54   : > { %p1231_p12 = scmp.ne.s32.totalorder %s1499_s30, %s1230_s20  ;;  %s1235_s11 = sshll.u32 %s1321_s28, 4  ;;  %s1236_s11 = int_to_ptr.vmem [resolvable:$false] %s1235_s11 }
  0x55   : > { %s1237_s12 = scalar_lea.vmem %s1236_s11, 128  ;;  %p1238_p4 = scmp.lt.s32.totalorder %s1499_s30, %s1236_s11 }
  0x56   : > { %p1233_p2 = pnand %p1231_p12, %p1217_p0  ;;  %p1239_p13 = scmp.lt.s32.totalorder %s1237_s12, %s1230_s20 }
  0x58   : > { %p1234_p5 = pneg %p1233_p2  ;;  %p1240_p6 = por %p1239_p13, %p1238_p4 }
  0x5a   : > { %p1241_p10 = pnand %p1240_p6, %p1234_p5 }
  0x5c   : > { %1244 = shalt.err (!%p1241_p10)
}
  0x5d   : > { %1076 = dma.hbm_to_vmem [thread:$0]  (!%p1501_p11), %s1497_s27, 64, %s1499_s30, %s184_s6  }
  0x5e   : > { %203 = sbr.rel (%p1404_p8) target bundleno = 1607 (0x647), region = 36  ;;  %s1533_s29 = sand.u32 (!%p1404_p8), 1, %s1307_s16  }
  0x5f   : > { %s945_s25 = sshll.u32 (!%p1404_p8), %s1533_s29, 2  ;;  %s206_s7 = scalar_lea.sflag (!%p1404_p8), [#allocation4], %s1533_s29 }
  0x60   : > { %s209_s8 = scalar_lea.vmem (!%p1404_p8), [#allocation3], %s945_s25  ;;  %p1686_p4 = scmp.ne.s32.totalorder (!%p1404_p8), %s1679_s21, 0 }
  0x65   : > { %1290 = dma.done.wait (%p1686_p4), %s206_s7, 64  }
  0x66   : > { %1292 = vsyncadd (%p1686_p4), %s206_s7, 4294967232  ;;  %p1687_p5 = scmp.eq.s32.totalorder %s1385_s19, 0 }
  0x68   : > { %1294 = dma.done.wait (%p1687_p5), [#allocation7], 512   ;;  %p1688_p11 = pmov %p1687_p5 }
  0x69   : > { %v1322_v0 = vmov 0.0   ;;  %vm1323_vm0 = vmmov 0   ;;  %v1139_v1 = vld [vmem:[#allocation6] sm:$0xff]   ;;  %v1140_v2 = vld [vmem:[#allocation6 + $0x8] sm:$0xff]   ;;  %v243_v3 = vld [vmem:[%s209_s8] sm:$0xf] }
  0x6a   : > { %1296 = vsyncadd (%p1688_p11), [#allocation7], 4294966784  ;;  %990 = vmatprep.subr.bf16.mxu0 %v1322_v0  ;;  %994 = vmatprep.mubr.msk.bf16.mxu0 %vm1323_vm0, %v1322_v0  ;;  %vm260_vm1 = vcmask 261120   ;;  %s1324_s21 = smov 120   ;;  %s1325_s23 = smov 96   ;;  %vm308_vm2 = vcmask 64512  }
  0x6b   : > { %998 = vmatprep.subr.bf16.mxu1 %v1322_v0  ;;  %1000 = vmatprep.mubr.msk.bf16.mxu1 %vm1323_vm0, %v1322_v0  ;;  %s1326_s27 = smov 80   ;;  %s1327_s30 = smov 88   ;;  %vm372_vm3 = vcmask 1043456   ;;  %vm531_vm4 = vcmask 130112   ;;  %vm647_vm5 = vcmask 195712   ;;  %vm763_vm6 = vcmask 261312  }
  0x6c   : > { %991 = vmatpush3.bf16.msra.mxu0 %v1139_v1  ;;  %s1328_s5 = smov 72   ;;  %s1329_s6 = smov 112  }
  0x6d   : > { %992 = vmatprep.subr.bf16.mxu0 %v1322_v0  ;;  %s1330_s26 = smov 104   ;;  %s1331_s10 = smov 56  }
  0x6e   : > { %s1332_s24 = smov 64   ;;  %s1333_s20 = smov 40  }
  0x6f   : > { %s1334_s28 = smov 48   ;;  %s1335_s11 = smov 8  }
  0x70   : > { %993 = vmatpush3.bf16.msra.mxu0 %v1140_v2  ;;  %s1336_s12 = smov 16   ;;  %s1337_s25 = smov 24  }
  0x71   : > { %1004 = vmatprep.subr.bf16.mxu0 %v1322_v0  ;;  %s948_s7 = sshll.u32 %s1533_s29, 3  ;;  %p1689_p0 = scmp.ne.s32.totalorder %s1684_s13, 0 }
  0x73   : > { %995 = vmatmul.mubr.msk.bf16.vlgmr.msra.gmra.mrb[0].mxu0 %vm260_vm1, %v243_v3 }
  0x74   : > { %1006 = vmatprep.mubr.msk.bf16.mxu0 %vm1323_vm0, %v1322_v0 }
 0x146   : > { %v298_v4 = vpop.f32.mrb[0].mxu0 }
 0x147   : > { %v1556_v5 = vpack.c.bf16 %v298_v4, %v298_v4  ;;  %v996_v6 = vpop.f32.mrb[1].mxu0 }
 0x148   : > { %v301_v7 = vpop.f32.mrb[2].mxu0 }
 0x149   : > { %417 = vrot.lane.b32.xlu1 %v1556_v5, %s1324_s21  ;;  %306 = vrot.lane.b32.xlu0 %v1556_v5, %s1325_s23  ;;  %v997_v8 = vpop.f32.mrb[3].mxu0  ;;  %s965_s23 = sshll.u32 %s1385_s19, 7  ;;  %s835_s19 = scalar_lea.sflag [#allocation5], %s1533_s29 }
 0x14d   : > { %535 = vrot.lane.b32.xlu1 %v1556_v5, %s1326_s27  ;;  %419 = vrot.lane.b32.xlu0 %v1556_v5, %s1327_s30  ;;  %s241_s27 = scalar_lea.vmem [#allocation9], %s948_s7 }
 0x14e   : > { %s848_s30 = sshll.u32 %s241_s27, 4  ;;  %s1628_s30 = int_to_ptr.vmem [resolvable:$true] %s848_s30 }
 0x151   : > { %651 = vrot.lane.b32.xlu1 %v1556_v5, %s1328_s5  ;;  %533 = vrot.lane.b32.xlu0 %v1556_v5, %s1329_s6 }
 0x155   : > { %649 = vrot.lane.b32.xlu0 %v1556_v5, %s1330_s26  ;;  %s1626_s26 = scalar_lea.hbm %s1675_s4, %s965_s23 }
 0x1bb   : > { %v307_v9 = vpop.permute.xlu0 %306  ;;  %v418_v12 = vpop.permute.xlu1 %417 }
 0x1bc   : > { %v313_v10 = vsel %vm308_vm2, %v307_v9, 0 }
 0x1bd   : > { %999 = vmatpush3.bf16.xpose.msra.mxu1 %v313_v10 }
 0x1be   : > { %1010 = vmatprep.subr.bf16.mxu1 %v1322_v0 }
 0x1bf   : > { %v420_v11 = vpop.permute.xlu0 %419  ;;  %v536_v14 = vpop.permute.xlu1 %535 }
 0x1c0   : > { %v425_v13 = vsel %vm308_vm2, %v420_v11, 0  ;;  %v541_v15 = vsel %vm308_vm2, %v536_v14, 0 }
 0x1c3   : > { %v652_v16 = vpop.permute.xlu1 %651  ;;  %v534_v17 = vpop.permute.xlu0 %533 }
 0x1c4   : > { %1001 = vmatmul.mubr.msk.bf16.vlgmr.msra.gmra.mrb[0].mxu1 %vm308_vm2, %v1556_v5  ;;  %v657_v18 = vsel %vm308_vm2, %v652_v16, 0 }
 0x1c5   : > { %1011 = vmatpush3.bf16.xpose.msra.mxu1 %v425_v13  ;;  %1012 = vmatprep.mubr.msk.bf16.mxu1 %vm1323_vm0, %v1322_v0 }
 0x1c6   : > { %1022 = vmatprep.subr.bf16.mxu1 %v1322_v0 }
 0x1c7   : > { %v650_v19 = vpop.permute.xlu0 %649 }
 0x1cc   : > { %1013 = vmatmul.mubr.msk.bf16.vlgmr.msra.gmra.mrb[4].mxu1 %vm308_vm2, %v418_v12 }
 0x1cd   : > { %1023 = vmatpush3.bf16.xpose.msra.mxu1 %v541_v15  ;;  %1024 = vmatprep.mubr.msk.bf16.mxu1 %vm1323_vm0, %v1322_v0 }
 0x1ce   : > { %1034 = vmatprep.subr.bf16.mxu1 %v1322_v0 }
 0x1d4   : > { %1025 = vmatmul.mubr.msk.bf16.vlgmr.msra.gmra.mrb[8].mxu1 %vm308_vm2, %v534_v17 }
 0x1d5   : > { %1035 = vmatpush3.bf16.xpose.msra.mxu1 %v657_v18  ;;  %1036 = vmatprep.mubr.msk.bf16.mxu1 %vm1323_vm0, %v1322_v0 }
 0x1d6   : > { %1046 = vmatprep.subr.bf16.mxu1 %v1322_v0 }
 0x1dc   : > { %1037 = vmatmul.mubr.msk.bf16.vlgmr.msra.gmra.mrb[12].mxu1 %vm308_vm2, %v650_v19 }
 0x1dd   : > { %1050 = vmatprep.mubr.msk.bf16.mxu1 %vm1323_vm0, %v1322_v0 }
 0x297   : > { %v349_v20 = vpop.f32.mrb[0].mxu1 }
 0x298   : > { %v1002_v21 = vpop.f32.mrb[1].mxu1  ;;  %v355_v22 = vsel %vm308_vm2, %v349_v20, -inf }
 0x299   : > { %356 = vmax.xlane.f32.xlu1 %v355_v22  ;;  %v352_v23 = vpop.f32.mrb[2].mxu1 }
 0x29a   : > { %v1003_v24 = vpop.f32.mrb[3].mxu1 }
 0x29f   : > { %v461_v25 = vpop.f32.mrb[4].mxu1 }
 0x2a0   : > { %v1014_v26 = vpop.f32.mrb[5].mxu1  ;;  %v467_v27 = vsel %vm308_vm2, %v461_v25, -inf }
 0x2a1   : > { %468 = vmax.xlane.f32.xlu0 %v467_v27  ;;  %v464_v28 = vpop.f32.mrb[6].mxu1 }
 0x2a2   : > { %v1015_v29 = vpop.f32.mrb[7].mxu1 }
 0x2a3   : > { %v1141_v29 = vld [vmem:[#allocation8] sm:$0xff]  }
 0x2a4   : > { %1047 = vmatpush3.bf16.msra.mxu1 %v1141_v29 }
 0x2a5   : > { %1048 = vmatprep.subr.bf16.mxu1 %v1322_v0 }
 0x2a7   : > { %v577_v30 = vpop.f32.mrb[8].mxu1 }
 0x2a8   : > { %v1026_v31 = vpop.f32.mrb[9].mxu1  ;;  %v583_v32 = vsel %vm308_vm2, %v577_v30, -inf }
 0x2a9   : > { %584 = vmax.xlane.f32.xlu0 %v583_v32  ;;  %v580_v33 = vpop.f32.mrb[10].mxu1 }
 0x2aa   : > { %v1027_v34 = vpop.f32.mrb[11].mxu1 }
 0x2af   : > { %v693_v35 = vpop.f32.mrb[12].mxu1 }
 0x2b0   : > { %v1038_v36 = vpop.f32.mrb[13].mxu1  ;;  %v699_v37 = vsel %vm308_vm2, %v693_v35, -inf }
 0x2b1   : > { %700 = vmax.xlane.f32.xlu1 %v699_v37  ;;  %v696_v38 = vpop.f32.mrb[14].mxu1 }
 0x2b2   : > { %v1039_v39 = vpop.f32.mrb[15].mxu1 }
 0x326   : > { %v357_v40 = vpop.xlane.xlu1 %356 }
 0x327   : > { %v358_v41 = vsub.f32 %v349_v20, %v357_v40 }
 0x329   : > { %v359_v42 = vmul.f32 1.442695, %v358_v41 }
 0x32b   : > { %1143 = vpow2.f32 %v359_v42 }
 0x32e   : > { %v469_v43 = vpop.xlane.xlu0 %468 }
 0x32f   : > { %v470_v44 = vsub.f32 %v461_v25, %v469_v43  ;;  %v960_v43 = vld [vmem:[%s1674_s3] ss:$0 sm:$0xff] }
 0x331   : > { %v471_v45 = vmul.f32 1.442695, %v470_v44 }
 0x333   : > { %1145 = vpow2.f32 %v471_v45 }
 0x335   : > { %v1144_v46 = vpop.eup %1143 }
 0x336   : > { %v585_v47 = vpop.xlane.xlu0 %584  ;;  %v361_v48 = vsel %vm308_vm2, %v1144_v46, 0.0 }
 0x337   : > { %v586_v49 = vsub.f32 %v577_v30, %v585_v47  ;;  %362 = vadd.xlane.f32.xlu0 %v361_v48  ;;  %v1142_v30 = vld [vmem:[#allocation8 + $0x8] sm:$0xff]  }
 0x338   : > { %1049 = vmatpush3.bf16.msra.mxu1 %v1142_v30 }
 0x339   : > { %v587_v50 = vmul.f32 1.442695, %v586_v49 }
 0x33b   : > { %1147 = vpow2.f32 %v587_v50 }
 0x33d   : > { %v1146_v51 = vpop.eup %1145 }
 0x33e   : > { %v473_v52 = vsel %vm308_vm2, %v1146_v51, 0.0  ;;  %v701_v55 = vpop.xlane.xlu1 %700 }
 0x33f   : > { %474 = vadd.xlane.f32.xlu1 %v473_v52  ;;  %v702_v56 = vsub.f32 %v693_v35, %v701_v55 }
 0x341   : > { %v703_v57 = vmul.f32 1.442695, %v702_v56 }
 0x343   : > { %1149 = vpow2.f32 %v703_v57 }
 0x345   : > { %v1148_v53 = vpop.eup %1147 }
 0x346   : > { %v589_v54 = vsel %vm308_vm2, %v1148_v53, 0.0 }
 0x347   : > { %590 = vadd.xlane.f32.xlu0 %v589_v54 }
 0x34d   : > { %v1150_v58 = vpop.eup %1149 }
 0x34e   : > { %v705_v59 = vsel %vm308_vm2, %v1150_v58, 0.0 }
 0x350   : > { %479 = vrot.lane.b32.xlu1 %v1556_v5, %s1331_s10  ;;  %s1245_s10 = scalar_lea.vmem %s1628_s30, 128 }
 0x351   : > { %p1246_p8 = scmp.ne.s32.totalorder %s1628_s30, %s1245_s10 }
 0x353   : > { %p1247_p1 = pnand %p1246_p8, %p1689_p0 }
 0x355   : > { %p1248_p3 = pneg %p1247_p1 }
 0x35d   : > { %367 = vrot.lane.b32.xlu0 %v1556_v5, %s1332_s24  ;;  %s1338_s24 = smov [#allocation9]  }
 0x361   : > { %711 = vrot.lane.b32.xlu0 %v1556_v5, %s1333_s20  ;;  %s1249_s20 = sshll.u32 %s1338_s24, 4  ;;  %s1250_s20 = int_to_ptr.vmem [resolvable:$false] %s1249_s20 }
 0x362   : > { %p1252_p7 = scmp.lt.s32.totalorder %s1628_s30, %s1250_s20 }
 0x374   : > { %706 = vadd.xlane.f32.xlu1 %v705_v59 }
 0x385   : > { %595 = vrot.lane.b32.xlu1 %v1556_v5, %s1334_s28  ;;  %s1251_s28 = scalar_lea.vmem %s1250_s20, 256 }
 0x386   : > { %p1253_p9 = scmp.lt.s32.totalorder %s1251_s28, %s1245_s10 }
 0x388   : > { %p1254_p12 = por %p1253_p9, %p1252_p7 }
 0x38a   : > { %p1255_p2 = pnand %p1254_p12, %p1248_p3 }
 0x3c4   : > { %v363_v60 = vpop.xlane.xlu0 %362 }
 0x3c5   : > { %1151 = vrcp.f32 %v363_v60 }
 0x3cc   : > { %v475_v61 = vpop.xlane.xlu1 %474 }
 0x3cd   : > { %1153 = vrcp.f32 %v475_v61 }
 0x3cf   : > { %v1152_v62 = vpop.eup %1151 }
 0x3d0   : > { %v365_v1 = vmul.f32 %v1152_v62, %v1144_v46  ;;  %v480_v4 = vpop.permute.xlu1 %479 }
 0x3d1   : > { %v485_v8 = vsel %vm372_vm3, %v480_v4, 0 }
 0x3d2   : > { %v366_v6 = vpack.c.bf16 %v365_v1, %v365_v1 }
 0x3d4   : > { %v591_v63 = vpop.xlane.xlu0 %590 }
 0x3d5   : > { %1155 = vrcp.f32 %v591_v63 }
 0x3d7   : > { %v1154_v7 = vpop.eup %1153 }
 0x3d8   : > { %v368_v2 = vpop.permute.xlu0 %367  ;;  %v477_v5 = vmul.f32 %v1154_v7, %v1146_v51 }
 0x3d9   : > { %v374_v3 = vsel %vm372_vm3, %v368_v2, 0 }
 0x3da   : > { %1005 = vmatpush3.bf16.msra.mxu0 %v374_v3  ;;  %v478_v9 = vpack.c.bf16 %v477_v5, %v477_v5 }
 0x3db   : > { %1016 = vmatprep.subr.bf16.mxu0 %v1322_v0 }
 0x3dc   : > { %v712_v15 = vpop.permute.xlu0 %711 }
 0x3dd   : > { %1007 = vmatmul.mubr.msk.bf16.vlgmr.msra.gmra.mrb[4].mxu0 %vm308_vm2, %v366_v6  ;;  %v717_v17 = vsel %vm372_vm3, %v712_v15, 0 }
 0x3de   : > { %1017 = vmatpush3.bf16.msra.mxu0 %v485_v8  ;;  %1018 = vmatprep.mubr.msk.bf16.mxu0 %vm1323_vm0, %v1322_v0 }
 0x3df   : > { %1028 = vmatprep.subr.bf16.mxu0 %v1322_v0  ;;  %v1156_v10 = vpop.eup %1155 }
 0x3e0   : > { %v593_v12 = vmul.f32 %v1156_v10, %v1148_v53 }
 0x3e2   : > { %v594_v16 = vpack.c.bf16 %v593_v12, %v593_v12 }
 0x3e5   : > { %1019 = vmatmul.mubr.msk.bf16.vlgmr.msra.gmra.mrb[8].mxu0 %vm308_vm2, %v478_v9 }
 0x3e6   : > { %1030 = vmatprep.mubr.msk.bf16.mxu0 %vm1323_vm0, %v1322_v0 }
 0x401   : > { %v707_v11 = vpop.xlane.xlu1 %706 }
 0x402   : > { %1157 = vrcp.f32 %v707_v11 }
 0x405   : > { %v596_v13 = vpop.permute.xlu1 %595 }
 0x406   : > { %v601_v14 = vsel %vm372_vm3, %v596_v13, 0 }
 0x407   : > { %1029 = vmatpush3.bf16.msra.mxu0 %v601_v14 }
 0x408   : > { %1040 = vmatprep.subr.bf16.mxu0 %v1322_v0 }
 0x40a   : > { %1031 = vmatmul.mubr.msk.bf16.vlgmr.msra.gmra.mrb[12].mxu0 %vm308_vm2, %v594_v16 }
 0x40b   : > { %1041 = vmatpush3.bf16.msra.mxu0 %v717_v17  ;;  %1042 = vmatprep.mubr.msk.bf16.mxu0 %vm1323_vm0, %v1322_v0 }
 0x40c   : > { %v1158_v18 = vpop.eup %1157 }
 0x40d   : > { %v709_v19 = vmul.f32 %v1158_v18, %v1150_v58 }
 0x40f   : > { %v710_v20 = vpack.c.bf16 %v709_v19, %v709_v19 }
 0x412   : > { %1043 = vmatmul.mubr.msk.bf16.vlgmr.msra.gmra.mrb[16].mxu0 %vm308_vm2, %v710_v20 }
 0x4b0   : > { %v410_v21 = vpop.f32.mrb[4].mxu0 }
 0x4b1   : > { %416 = vst.msk [vmem:[#allocation2] sm:$0xff] %vm308_vm2, %v410_v21  ;;  %v1008_v22 = vpop.f32.mrb[5].mxu0 }
 0x4b2   : > { %v413_v23 = vpop.f32.mrb[6].mxu0 }
 0x4b3   : > { %v1009_v24 = vpop.f32.mrb[7].mxu0 }
 0x4b8   : > { %v521_v25 = vpop.f32.mrb[8].mxu0 }
 0x4b9   : > { %528 = vrot.lane.b32.xlu1 %v521_v25, %s1335_s11  ;;  %v1020_v26 = vpop.f32.mrb[9].mxu0 }
 0x4ba   : > { %v524_v27 = vpop.f32.mrb[10].mxu0 }
 0x4bb   : > { %v1021_v28 = vpop.f32.mrb[11].mxu0 }
 0x4dd   : > { %v637_v31 = vpop.f32.mrb[12].mxu0 }
 0x4de   : > { %644 = vrot.lane.b32.xlu0 %v637_v31, %s1336_s12  ;;  %v1032_v32 = vpop.f32.mrb[13].mxu0 }
 0x4df   : > { %v640_v33 = vpop.f32.mrb[14].mxu0 }
 0x4e0   : > { %v1033_v34 = vpop.f32.mrb[15].mxu0 }
 0x4e5   : > { %v753_v35 = vpop.f32.mrb[16].mxu0 }
 0x4e6   : > { %760 = vrot.lane.b32.xlu1 %v753_v35, %s1337_s25  ;;  %v1044_v36 = vpop.f32.mrb[17].mxu0 }
 0x4e7   : > { %v756_v37 = vpop.f32.mrb[18].mxu0 }
 0x4e8   : > { %v1045_v38 = vpop.f32.mrb[19].mxu0 }
 0x52b   : > { %v529_v39 = vpop.permute.xlu1 %528 }
 0x52c   : > { %532 = vst.msk [vmem:[#allocation2] sm:$0xff] %vm531_vm4, %v529_v39 }
 0x550   : > { %v645_v0 = vpop.permute.xlu0 %644 }
 0x551   : > { %648 = vst.msk [vmem:[#allocation2] sm:$0xff] %vm647_vm5, %v645_v0 }
 0x558   : > { %v761_v40 = vpop.permute.xlu1 %760 }
 0x559   : > { %764 = vst.msk [vmem:[#allocation2] sm:$0xff] %vm763_vm6, %v761_v40 }
 0x560   : > { %v765_v41 = vld [vmem:[#allocation2] sm:$0xff] }
 0x561   : > { %v766_v42 = vpack.c.bf16 %v765_v41, %v765_v41 }
 0x563   : > { %1051 = vmatmul.mubr.msk.bf16.vlgmr.msra.gmra.mrb[16].mxu1 %vm260_vm1, %v766_v42 }
 0x636   : > { %v827_v44 = vpop.f32.mrb[16].mxu1 }
 0x637   : > { %v828_v45 = vadd.f32 %v960_v43, %v827_v44  ;;  %v1052_v46 = vpop.f32.mrb[17].mxu1 }
 0x638   : > { %v830_v47 = vpop.f32.mrb[18].mxu1 }
 0x639   : > { %v1053_v48 = vpop.f32.mrb[19].mxu1  ;;  %833 = vst.msk [vmem:[%s241_s27] sm:$0xff] %vm260_vm1, %v828_v45 }
 0x63a   : > { %1258 = shalt.err (!%p1255_p2)
}
 0x63b   : > { %s1259_s29 = scalar_lea.hbm %s1626_s26, 128  ;;  %s1263_s25 = scalar_lea.hbm %s1675_s4, 256 }
 0x63c   : > { %p1260_p13 = scmp.ne.s32.totalorder %s1626_s26, %s1259_s29  ;;  %p1264_p4 = scmp.lt.u32.totalorder %s1626_s26, %s1675_s4 }
 0x63d   : > { %p1265_p5 = scmp.lt.u32.totalorder %s1263_s25, %s1259_s29  ;;  %p1267_p8 = scmp.lt.u32.totalorder %s1259_s29, %s1626_s26 }
 0x63e   : > { %p1261_p6 = pnand %p1260_p13, %p1689_p0 }
 0x63f   : > { %p1266_p11 = por %p1265_p5, %p1264_p4 }
 0x640   : > { %p1262_p10 = pneg %p1261_p6 }
 0x641   : > { %p1268_p1 = por %p1267_p8, %p1266_p11 }
 0x643   : > { %p1269_p3 = pnand %p1268_p1, %p1262_p10 }
 0x645   : > { %1272 = shalt.err (!%p1269_p3)
}
 0x646   : > { %1064 = dma.vmem_to_hbm [thread:$0]  (%p1689_p0), %s1628_s30, 128, %s1626_s26, %s835_s19  }
 0x647 PF: > { %s860_s21 = sand.u32 1, %s1303_s15   ;;  %p1690_p7 = scmp.ne.s32.totalorder %s1680_s22, 0 }
 0x648   : > { %p1691_p9 = scmp.ge.s32.totalorder %s1315_s18, 2  ;;  %s861_s23 = scalar_lea.sflag [#allocation5], %s860_s21 }
 0x64a   : > { %p1078_p12 = pnand %p1691_p9, %p1690_p7 }
 0x64c   : > { %1298 = dma.done.wait (!%p1078_p12), %s861_s23, 128  }
 0x64d   : > { %1300 = vsyncadd (!%p1078_p12), %s861_s23, 4294967168  ;;  %p18_p2 = scmp.ge.s32.totalorder %s1474_s9, 4   ;;  %s1692_s15 = smov %s1307_s16 }
 0x64e   : > { %s1693_s16 = smov %s1311_s17  ;;  %s1694_s17 = smov %s1490_s14 }
 0x64f   : > { %s1695_s18 = smov %s1474_s9  ;;  %20 = sbr.rel (!%p18_p2) target bundleno = 6 (0x6), region = 89 }
 0x656   :  { %866 = vsyncpa [#allocation4], 1 }
 0x657   :  { %868 = vsyncpa [#allocation4 + $0x1], 1 }
 0x658   :  { %869 = vsyncpa [#allocation7], 1 }
 0x659   :  { %870 = vsyncpa [#allocation5], 1 }
 0x65a   :  { %872 = vsyncpa [#allocation5 + $0x1], 1 }

</bundles_post_ra>
